<compile_context>
chip_gen: v6e
topology: v6e:2x2x1
jax: 0.10.0
libtpu: 0.0.40
codegen_flags: <defaults>
</compile_context>

<pallas_src>
import functools

import jax
import jax.numpy as jnp
from jax import lax
from jax.experimental import pallas as pl
from jax.experimental.pallas import tpu as pltpu


def _round_up(x, m):
    return (x + m - 1) // m * m


def _vmem_estimate(T, N, C, Cpad, G, K):
    """Rough per-core VMEM footprint (bytes) of the attention kernel."""
    invariant = 2 * N * G * 2 + 3 * N * 4                # database (worst case x2) + pT
    weights = (Cpad * C + 6 * C * C + 2 * C * Cpad) * 4
    tiles = 2 * (T * 3 * 4 + 2 * T * Cpad * 4)           # double-buffered in/out tiles
    select = 3 * T * N * 4 + K * T * N * 2               # d / col / diff + one-hot scratch
    slabs = K * T * G * 4 + 8 * K * T * C * 4            # gathered slab + MLP slabs
    return invariant + weights + tiles + select + slabs


def _pick_tile(N, C, Cpad, G, K, vmem_cap):
    budget = int(0.6 * vmem_cap)
    n16 = _round_up(N, 16)
    # 128 MiB parts (v5e/v6e): T=256 fills the 256-row MXU (v6e) and halves the
    # grid-step count.  64 MiB parts (v7x): start at 128 so VMEM stays lean and
    # the parallel grid keeps >= 2 steps for the two TensorCores.
    base = 256 if vmem_cap >= (96 << 20) else 128
    cands = [t for t in (256, 128, 64, 32, 16) if t <= base]
    if n16 < cands[0]:
        cands = [n16]
    for t in cands:
        if _vmem_estimate(t, N, C, Cpad, G, K) <= budget:
            return t
    # TODO(synk): stream the neighbour database in N-chunks for huge N.
    return cands[-1]


# --------------------------------------------------------------------------
# Kernel 1: fused linear_in + K/V projection (+ hi/lo coordinate columns)
# --------------------------------------------------------------------------
def _kv_kernel(aug_ref, w_ref, b_ref, kv_ref):
    # Single lane-dense MXU pass:  [features | p_hi | p_lo] @ W_aug + b_aug
    # -> [f_k | f_v | p_hi | p_lo | 0] (the coordinate columns pass through an
    # identity sub-block exactly, since one-hot weights are exact in bf16).
    kv = jnp.dot(aug_ref[...], w_ref[...],
                 preferred_element_type=jnp.float32) + b_ref[...]
    kv_ref[...] = kv.astype(kv_ref.dtype)


# --------------------------------------------------------------------------
# Kernel 2: kNN + positional encoding + vector attention + linear_out + res.
# --------------------------------------------------------------------------
def _pt_attn_kernel(k_nn,
                    pq_ref, feat_ref,
                    pT_ref, gsrc_ref,
                    w_inq_ref, b_inq_ref,
                    wp1_ref, bp1_ref, wp2_ref,
                    s1_ref, t1_ref, wa1_ref, ba1_ref, wa2_ref, ba2_ref,
                    wo_ref, bo_ref,
                    out_ref,
                    oh_ref):
    f32, bf16 = jnp.float32, jnp.bfloat16

    pq = pq_ref[...]                    # (T, 3)    f32 query points (tile)
    feat = feat_ref[...]                # (T, Cpad) f32 input features (residual)
    pT = pT_ref[...]                    # (3, N)    f32 all points, transposed
    gsrc = gsrc_ref[...]                # (N, G)    bf16 [f_k | f_v | p_hi | p_lo]

    T = pq.shape[0]
    N = pT.shape[1]
    C = wp2_ref.shape[1]
    K = k_nn

    # f_q = (features @ W_in + b_in) @ W_q, with linear_in folded on the host.
    fq = jnp.dot(feat.astype(bf16), w_inq_ref[...],
                 preferred_element_type=f32) + b_inq_ref[...]        # (T, C)

    # Exact pairwise squared distances on the VPU (no norm-expansion trick).
    d = jnp.zeros((T, N), f32)
    for c in range(3):
        diff = pq[:, c:c + 1] - pT[c:c + 1, :]                       # (T,1)-(1,N)
        d = d + diff * diff

    col = lax.broadcasted_iota(jnp.int32, (T, N), 1)

    # ---- phase 1: k-NN selection; the k one-hot rows go to a VMEM scratch ----
    # TODO(synk): fuse the two cross-lane reductions per round into one by
    #             packing the column index into the low mantissa bits of the
    #             non-negative f32 distance; skipped here because it perturbs
    #             the tie-break vs the exact lax.top_k reference.
    for j in range(K):
        mn = jnp.min(d, axis=-1, keepdims=True)                      # (T, 1)
        idx = jnp.min(jnp.where(d <= mn, col, N), axis=-1, keepdims=True)
        hit = col == idx                                             # (T, N)
        oh_ref[j * T:(j + 1) * T, :] = hit.astype(bf16)
        d = jnp.where(hit, jnp.inf, d)   # exclude picked neighbour next round

    # ---- phase 2: ONE batched gather matmul for all k neighbours ----
    oh = oh_ref[...]                                                 # (K*T, N) bf16
    g = jnp.dot(oh, gsrc, preferred_element_type=f32)                # (K*T, G)
    knn_k = g[:, :C]
    knn_v = g[:, C:2 * C]
    knn_p = g[:, 2 * C:2 * C + 3] + g[:, 2 * C + 3:2 * C + 6]        # hi + lo coords

    pq_rep = jnp.concatenate([pq] * K, axis=0)                       # (K*T, 3)
    fq_rep = jnp.concatenate([fq] * K, axis=0)                       # (K*T, C)

    # mlp_pos: Lin(3,3) [pos-BN folded] -> ReLU -> Lin(3,C), batched over k.
    rel = pq_rep - knn_p
    h = jnp.maximum(
        jnp.dot(rel, wp1_ref[...], preferred_element_type=f32) + bp1_ref[...],
        0.0)
    enc = jnp.dot(h, wp2_ref[...], preferred_element_type=f32)       # (K*T, C)

    # mlp_attn: BN -> ReLU -> Lin [BN2 folded] -> ReLU -> Lin(+bias), batched.
    a = jnp.maximum((fq_rep - knn_k + enc) * s1_ref[...] + t1_ref[...], 0.0)
    a = jnp.dot(a.astype(bf16), wa1_ref[...],
                preferred_element_type=f32) + ba1_ref[...]
    a = jnp.maximum(a, 0.0)
    logits = jnp.dot(a.astype(bf16), wa2_ref[...],
                     preferred_element_type=f32) + ba2_ref[...]      # (K*T, C)
    vals = knn_v + enc                                               # (K*T, C)

    # ---- softmax over the k neighbours (online over the k sublane slices) ----
    m = logits[0:T, :]
    for j in range(1, K):
        m = jnp.maximum(m, logits[j * T:(j + 1) * T, :])
    ssum = jnp.zeros((T, C), f32)
    acc = jnp.zeros((T, C), f32)
    for j in range(K):
        e = jnp.exp(logits[j * T:(j + 1) * T, :] - m)
        ssum = ssum + e
        acc = acc + e * vals[j * T:(j + 1) * T, :]
    attn = acc * pl.reciprocal(ssum, approx=True)                    # (T, C)

    # linear_out into the lane-dense Cpad slab + residual.
    out = jnp.dot(attn.astype(bf16), wo_ref[...],
                  preferred_element_type=f32) + bo_ref[...]
    out_ref[...] = (out + feat).astype(out_ref.dtype)


# --------------------------------------------------------------------------
# Wrapper
# --------------------------------------------------------------------------
def point_transformer_block(points, features, params, k):
    N, C = features.shape
    assert k <= N
    f32, bf16 = jnp.float32, jnp.bfloat16

    Cpad = _round_up(max(C, 128), 128)          # lane-dense output slab
    G = _round_up(2 * C + 6, 128)               # lane-dense [K|V|p_hi|p_lo] slab

    try:
        vmem_cap = pltpu.get_tpu_info().vmem_capacity_bytes
    except Exception:
        vmem_cap = 64 * 1024 * 1024
    T = _pick_tile(N, C, Cpad, G, k, vmem_cap)
    NP = _round_up(N, T)
    pad_r = NP - N
    grid = (NP // T,)

    cparams = pltpu.CompilerParams(
        dimension_semantics=("parallel",),
        vmem_limit_bytes=int(min(0.85 * vmem_cap, 112 * 1024 * 1024)))

    pts_f32 = points.astype(f32)
    feat_f32 = features.astype(f32)

    # ---- fold eval-mode BatchNorm1d into per-channel affines ----
    def bn_affine(gamma, beta, mean, var, eps=1e-5):
        scale = gamma / jnp.sqrt(var + eps)
        return scale, beta - mean * scale

    sp, tp = bn_affine(*params['pos_bn'])
    s1, t1 = bn_affine(*params['attn_bn1'])
    s2, t2 = bn_affine(*params['attn_bn2'])

    w_p1f = (params['w_p1'] * sp[None, :]).astype(f32)        # pos BN folded
    b_p1f = tp.reshape(1, 3).astype(f32)
    w_a1f = (params['w_a1'] * s2[None, :]).astype(bf16)       # attn BN2 folded
    b_a1f = t2.reshape(1, C).astype(f32)

    # ---- fold linear_in into the Q and K|V projections (host side) ----
    w_kv_cat = jnp.concatenate([params['w_k'], params['w_v']], axis=1)   # (C, 2C)
    w_kv = params['w_in'] @ w_kv_cat                                     # (C, 2C)
    b_kv = params['b_in'] @ w_kv_cat                                     # (2C,)
    w_inq = jnp.pad(params['w_in'] @ params['w_q'],
                    ((0, Cpad - C), (0, 0))).astype(bf16)                # (Cpad, C)
    b_inq = (params['b_in'] @ params['w_q']).reshape(1, C).astype(f32)

    # kernel-1 augmented operands: one matmul emits [K | V | p_hi | p_lo | 0]
    eye3 = jnp.eye(3, dtype=f32)
    w_aug = jnp.zeros((C + 6, G), f32)
    w_aug = w_aug.at[:C, :2 * C].set(w_kv)
    w_aug = w_aug.at[C:C + 3, 2 * C:2 * C + 3].set(eye3)
    w_aug = w_aug.at[C + 3:C + 6, 2 * C + 3:2 * C + 6].set(eye3)
    w_aug = w_aug.astype(bf16)
    b_aug = jnp.zeros((1, G), f32).at[0, :2 * C].set(b_kv)

    p_hi = pts_f32.astype(bf16)
    p_lo = (pts_f32 - p_hi.astype(f32)).astype(bf16)
    aug_in = jnp.concatenate([feat_f32.astype(bf16), p_hi, p_lo], axis=1)
    aug_in = jnp.pad(aug_in, ((0, pad_r), (0, 0)))                       # (NP, C+6)

    # ---------------- kernel 1: fused linear_in + K/V database ---------------
    kv = pl.pallas_call(
        _kv_kernel,
        out_shape=jax.ShapeDtypeStruct((NP, G), bf16),
        grid=grid,
        in_specs=[
            pl.BlockSpec((T, C + 6), lambda i: (i, 0)),
            pl.BlockSpec((C + 6, G), lambda i: (0, 0)),
            pl.BlockSpec((1, G), lambda i: (0, 0)),
        ],
        out_specs=pl.BlockSpec((T, G), lambda i: (i, 0)),
        compiler_params=cparams,
    )(aug_in, w_aug, b_aug)

    gsrc = kv[:N]                        # (N, G)  bf16 neighbour database
    pT = pts_f32.T                       # (3, N)  f32 for exact distances

    pts_pad = jnp.pad(pts_f32, ((0, pad_r), (0, 0)))
    feat_pad = jnp.pad(feat_f32, ((0, pad_r), (0, Cpad - C)))

    w_p2f = params['w_p2'].astype(f32)
    s1_r = s1.reshape(1, C).astype(f32)
    t1_r = t1.reshape(1, C).astype(f32)
    w_a2b = params['w_a2'].astype(bf16)
    b_a2r = params['b_a2'].reshape(1, C).astype(f32)
    w_o_pad = jnp.pad(params['w_o'], ((0, 0), (0, Cpad - C))).astype(bf16)
    b_o_pad = jnp.pad(params['b_o'], (0, Cpad - C)).reshape(1, Cpad).astype(f32)

    kernel = functools.partial(_pt_attn_kernel, k)

    # ---------------- kernel 2: kNN vector attention + out -------------------
    def _attn_call(single_buffer_invariants):
        def inv(shape):
            r = len(shape)
            if single_buffer_invariants:
                return pl.BlockSpec(shape, lambda i: (0,) * r,
                                    pipeline_mode=pl.Buffered(1))
            return pl.BlockSpec(shape, lambda i: (0,) * r)

        out = pl.pallas_call(
            kernel,
            out_shape=jax.ShapeDtypeStruct((NP, Cpad), f32),
            grid=grid,
            in_specs=[
                pl.BlockSpec((T, 3), lambda i: (i, 0)),     # query points tile
                pl.BlockSpec((T, Cpad), lambda i: (i, 0)),  # feature tile (residual+f_q)
                inv((3, N)),                                # all points, transposed
                inv((N, G)),                                # [K|V|p_hi|p_lo] database
                inv((Cpad, C)), inv((1, C)),                # folded W_in@W_q / bias
                inv((3, 3)), inv((1, 3)), inv((3, C)),      # mlp_pos (BN folded)
                inv((1, C)), inv((1, C)),                   # attn BN1 scale / shift
                inv((C, C)), inv((1, C)),                   # w_a1 (BN2 folded) / bias
                inv((C, C)), inv((1, C)),                   # w_a2 / b_a2
                inv((C, Cpad)), inv((1, Cpad)),             # linear_out (lane-dense)
            ],
            out_specs=pl.BlockSpec((T, Cpad), lambda i: (i, 0)),
            scratch_shapes=[pltpu.VMEM((k * T, N), bf16)],  # one-hot selection rows
            compiler_params=cparams,
        )(pts_pad, feat_pad, pT, gsrc,
          w_inq, b_inq, w_p1f, b_p1f, w_p2f,
          s1_r, t1_r, w_a1f, b_a1f, w_a2b, b_a2r,
          w_o_pad, b_o_pad)
        return jax.block_until_ready(out)

    try:
        out_pad = _attn_call(True)       # single-buffer grid-invariant inputs
    except Exception:
        out_pad = _attn_call(False)      # fallback: default double-buffering

    return out_pad[:N, :C]


# --------------------------------------------------------------------------
# Pure-JAX reference (f32), direct transcription of the PyTorch module
# --------------------------------------------------------------------------
def _reference(points, features, params, k):
    def bn(x, bn_params, eps=1e-5):
        gamma, beta, mean, var = bn_params
        return (x - mean) / jnp.sqrt(var + eps) * gamma + beta

    lin = features @ params['w_in'] + params['b_in']
    f_q = lin @ params['w_q']
    f_k = lin @ params['w_k']
    f_v = lin @ params['w_v']

    d2 = jnp.sum((points[:, None, :] - points[None, :, :]) ** 2, axis=-1)
    _, idx = lax.top_k(-d2, k)                    # (N, k) nearest (incl. self)

    knn_p = points[idx]                           # (N, k, 3)
    knn_k = f_k[idx]
    knn_v = f_v[idx]
    rel = points[:, None, :] - knn_p

    h = rel @ params['w_p1']
    h = jax.nn.relu(bn(h, params['pos_bn']))
    enc = h @ params['w_p2']                      # (N, k, C)

    vec = f_q[:, None, :] - knn_k + enc
    a = jax.nn.relu(bn(vec, params['attn_bn1']))
    a = a @ params['w_a1']
    a = jax.nn.relu(bn(a, params['attn_bn2']))
    logits = a @ params['w_a2'] + params['b_a2']
    w = jax.nn.softmax(logits, axis=1)
    out = jnp.sum(w * (knn_v + enc), axis=1)
    return out @ params['w_o'] + params['b_o'] + features


if __name__ == "__main__":
    N, C, K = 16, 32, 4

    key = jax.random.PRNGKey(0)
    keys = jax.random.split(key, 26)

    points = jax.random.normal(keys[0], (N, 3), jnp.float32)
    features = jax.random.normal(keys[1], (N, C), jnp.float32)

    def w(k_, shape, s=0.1):
        return jax.random.normal(k_, shape, jnp.float32) * s

    def bn_params(k0, k1, k2, k3, ch):
        return (1.0 + 0.1 * jax.random.normal(k0, (ch,), jnp.float32),   # gamma
                0.1 * jax.random.normal(k1, (ch,), jnp.float32),         # beta
                0.1 * jax.random.normal(k2, (ch,), jnp.float32),         # run mean
                1.0 + 0.1 * jnp.abs(jax.random.normal(k3, (ch,), jnp.float32)))

    params = {
        'w_in': w(keys[2], (C, C)), 'b_in': w(keys[3], (C,)),
        'w_q': w(keys[4], (C, C)),
        'w_k': w(keys[5], (C, C)),
        'w_v': w(keys[6], (C, C)),
        'w_p1': w(keys[7], (3, 3), 0.5),
        'w_p2': w(keys[8], (3, C), 0.5),
        'w_a1': w(keys[9], (C, C)),
        'w_a2': w(keys[10], (C, C)), 'b_a2': w(keys[11], (C,)),
        'w_o': w(keys[12], (C, C)), 'b_o': w(keys[13], (C,)),
        # eval-mode BatchNorm1d parameters: (gamma, beta, running_mean, running_var)
        'pos_bn': bn_params(keys[14], keys[15], keys[16], keys[17], 3),
        'attn_bn1': bn_params(keys[18], keys[19], keys[20], keys[21], C),
        'attn_bn2': bn_params(keys[22], keys[23], keys[24], keys[25], C),
    }

    out = point_transformer_block(points, features, params, K)
    out = jax.block_until_ready(out)

    ref = _reference(points, features, params, K)
    assert out.shape == (N, C)
    max_err = jnp.max(jnp.abs(out - ref))
    # bf16 K/V database + bf16 matmuls (f32 accumulation) -> loose tolerance
    assert jnp.allclose(out, ref, atol=7e-2, rtol=7e-2), float(max_err)

    print("KERNEL_OK")
</pallas_src>

<mosaic_0001>
module attributes {stable_mosaic.version = 11 : i64} {
  func.func @_kv_kernel(%arg0: i32, %arg1: memref<16x38xbf16, #tpu.memory_space<vmem>>, %arg2: memref<38x128xbf16, #tpu.memory_space<vmem>>, %arg3: memref<1x128xf32, #tpu.memory_space<vmem>>, %arg4: memref<16x128xbf16, #tpu.memory_space<vmem>>) attributes {dimension_semantics = [#tpu.dimension_semantics<parallel>], iteration_bounds = array<i64: 1>, scalar_prefetch = 0 : i64, scratch_operands = 0 : i64, tpu.core_type = #tpu.core_type<tc>, window_params = [{transform_indices = @transform_0, window_bounds = array<i64: 16, 38>}, {pipeline_mode = #tpu.pipeline_mode<synchronous>, transform_indices = @transform_1, window_bounds = array<i64: 38, 128>}, {pipeline_mode = #tpu.pipeline_mode<synchronous>, transform_indices = @transform_2, window_bounds = array<i64: 1, 128>}, {transform_indices = @transform_3, window_bounds = array<i64: 16, 128>}]} {
    %c0 = arith.constant 0 : index
    %c0_0 = arith.constant 0 : index
    %0 = vector.load %arg1[%c0, %c0_0] : memref<16x38xbf16, #tpu.memory_space<vmem>>, vector<16x38xbf16>
    %c0_1 = arith.constant 0 : index
    %c0_2 = arith.constant 0 : index
    %1 = vector.load %arg2[%c0_1, %c0_2] : memref<38x128xbf16, #tpu.memory_space<vmem>>, vector<38x128xbf16>
    %cst = arith.constant dense<0.000000e+00> : vector<16x128xf32>
    %2 = tpu.matmul %0, %1, %cst {dimension_numbers = #tpu.dot_dimension_numbers<[1], [0], [0], [1], [0, 0, 1, 1], [], []>} : vector<16x38xbf16>, vector<38x128xbf16>, vector<16x128xf32> -> vector<16x128xf32>
    %c0_3 = arith.constant 0 : index
    %c0_4 = arith.constant 0 : index
    %3 = vector.load %arg3[%c0_3, %c0_4] : memref<1x128xf32, #tpu.memory_space<vmem>>, vector<1x128xf32>
    %4 = vector.broadcast %3 : vector<1x128xf32> to vector<16x128xf32>
    %5 = arith.addf %2, %4 : vector<16x128xf32>
    %6 = arith.truncf %5 : vector<16x128xf32> to vector<16x128xbf16>
    %c0_5 = arith.constant 0 : index
    %c0_6 = arith.constant 0 : index
    %7 = vector.load %arg4[%c0_5, %c0_6] : memref<16x128xbf16, #tpu.memory_space<vmem>>, vector<16x128xbf16>
    tpu.vector_store %arg4[%c0_5, %c0_6], %6 {strides = array<i32>} : memref<16x128xbf16, #tpu.memory_space<vmem>>, vector<16x128xbf16>,
    return
  }
  func.func @transform_0(%arg0: i32) -> (i32, i32) {
    %c0_i32 = arith.constant 0 : i32
    %c0_i32_0 = arith.constant 0 : i32
    return %arg0, %c0_i32 : i32, i32
  }
  func.func @transform_1(%arg0: i32) -> (i32, i32) {
    %c0_i32 = arith.constant 0 : i32
    %c0_i32_0 = arith.constant 0 : i32
    %c0_i32_1 = arith.constant 0 : i32
    return %c0_i32, %c0_i32_0 : i32, i32
  }
  func.func @transform_2(%arg0: i32) -> (i32, i32) {
    %c0_i32 = arith.constant 0 : i32
    %c0_i32_0 = arith.constant 0 : i32
    %c0_i32_1 = arith.constant 0 : i32
    return %c0_i32, %c0_i32_0 : i32, i32
  }
  func.func @transform_3(%arg0: i32) -> (i32, i32) {
    %c0_i32 = arith.constant 0 : i32
    %c0_i32_0 = arith.constant 0 : i32
    return %arg0, %c0_i32 : i32, i32
  }
}

</mosaic_0001>

<bundles_post_ra>
// kernel: tpu_custom_call.1
= control target key start
LH: loop header
LB: loop body
LE: loop exit
PB: predicated region body
PF: predicated region fallthrough
CT: control target
= control target key end

     0   :  { %8 = vsyncpa [#allocation3], 0  ;;  %s309_s0 = inlined_call_operand.hbm [shape: bf16[16,38], index: 0, kind: input, shape index: {}]   ;;  %s310_s1 = inlined_call_operand.hbm [shape: bf16[38,128], index: 1, kind: input, shape index: {}]   ;;  %s311_s2 = inlined_call_operand.vmem [shape: f32[1,128], index: 2, kind: input, shape index: {}]   ;;  %s312_s3 = inlined_call_operand.hbm [shape: bf16[16,128], index: 3, kind: output, shape index: {}]  }
   0x1   :  { %9 = vsyncpa [#allocation6], 0 }
   0x2   :  { %10 = vsyncpa [#allocation4], 0  ;;  %s261_s12 = smov [#allocation2]  }
   0x3   :  { %s16_s13 = sshll.u32 %s261_s12, 4  ;;  %s17_s13 = int_to_ptr.vmem [resolvable:$true] %s16_s13 }
   0x4   :  { %s203_s14 = scalar_lea.vmem %s17_s13, 128  ;;  %p208_p1 = scmp.lt.s32.totalorder %s17_s13, %s17_s13 }
   0x5   :  { %p204_p0 = scmp.ne.s32.totalorder %s17_s13, %s203_s14  ;;  %p209_p2 = scmp.lt.s32.totalorder %s203_s14, %s203_s14 }
   0x7   :  { %p210_p3 = por %p209_p2, %p208_p1 }
   0x9   :  { %p211_p4 = pnand %p210_p3, %p204_p0 }
   0xb   :  { %214 = shalt.err (!%p211_p4)
}
   0xc   :  { %s262_s15 = smov 64   ;;  %s263_s16 = smov 4  }
   0xd   :  { %22 = dma.hbm_to_vmem [thread:$0]  %s309_s0, 128, %s17_s13, [#allocation3], %s262_s15, %s262_s15, %s263_s16  }
   0xe   :  { %s264_s19 = smov [#allocation5]  }
   0xf   :  { %s28_s20 = sshll.u32 %s264_s19, 4  ;;  %s29_s20 = int_to_ptr.vmem [resolvable:$true] %s28_s20 }
  0x10   :  { %s223_s21 = scalar_lea.vmem %s29_s20, 320  ;;  %p228_p6 = scmp.lt.s32.totalorder %s29_s20, %s29_s20 }
  0x11   :  { %p224_p5 = scmp.ne.s32.totalorder %s29_s20, %s223_s21  ;;  %p229_p7 = scmp.lt.s32.totalorder %s223_s21, %s223_s21 }
  0x13   :  { %p230_p8 = por %p229_p7, %p228_p6 }
  0x15   :  { %p231_p9 = pnand %p230_p8, %p224_p5 }
  0x17   :  { %234 = shalt.err (!%p231_p9)
}
  0x18   :  { %34 = dma.hbm_to_vmem [thread:$0]  %s310_s1, 320, %s29_s20, [#allocation6], %s262_s15, %s262_s15, %s263_s16  }
  0x19   :  { %255 = dma.done.wait [#allocation3], 128  }
  0x1a   :  { %256 = vsyncadd [#allocation3], 4294967168 }
  0x1b   :  { %257 = dma.done.wait [#allocation6], 320  }
  0x1c   :  { %258 = vsyncadd [#allocation6], 4294966976  ;;  %v265_v0 = vmov 0.0   ;;  %vm266_vm0 = vmmov 0   ;;  %vm82_vm1 = vcmask 1042432   ;;  %v192_v3 = vld [vmem:[#allocation5 + $0x8] sm:$0xff]  }
  0x1d   :  { %174 = vmatprep.subr.bf16.mxu0 %v265_v0  ;;  %180 = vmatprep.mubr.msk.bf16.mxu0 %vm266_vm0, %v265_v0  ;;  %v191_v1 = vld [vmem:[#allocation5 + $0x10] ss:$0 sps:$4 sm:$0x77]   ;;  %v193_v4 = vld [vmem:[#allocation5] sm:$0xff]   ;;  %v194_v5 = vld [vmem:[#allocation2] sm:$0xff]   ;;  %vm78_vm2 = vcmask 310272  }
  0x1e   :  { %v84_v2 = vsel %vm82_vm1, %v191_v1, 0  ;;  %v155_v7 = vld [vmem:[%s311_s2] ss:$0 sm:$0xff]  ;;  %s267_s24 = smov [#allocation7]  }
  0x1f   :  { %175 = vmatpush3.bf16.msra.mxu0 %v84_v2  ;;  %s142_s25 = sshll.u32 %s267_s24, 4  ;;  %s143_s25 = int_to_ptr.vmem [resolvable:$true] %s142_s25 }
  0x20   :  { %176 = vmatprep.subr.bf16.mxu0 %v265_v0  ;;  %s235_s26 = scalar_lea.vmem %s143_s25, 128  ;;  %p240_p11 = scmp.lt.s32.totalorder %s143_s25, %s143_s25 }
  0x21   :  { %p236_p10 = scmp.ne.s32.totalorder %s143_s25, %s235_s26  ;;  %p241_p12 = scmp.lt.s32.totalorder %s235_s26, %s235_s26 }
  0x23   :  { %177 = vmatpush3.bf16.msra.mxu0 %v192_v3  ;;  %p242_p13 = por %p241_p12, %p240_p11 }
  0x24   :  { %178 = vmatprep.subr.bf16.mxu0 %v265_v0 }
  0x25   :  { %p243_p0 = pnand %p242_p13, %p236_p10 }
  0x27   :  { %179 = vmatpush3.bf16.msra.mxu0 %v193_v4 }
  0x2a   :  { %181 = vmatmul.mubr.msk.bf16.vlgmr.msra.gmra.mxu0 %vm78_vm2, %v194_v5 }
  0xea   :  { %v120_v6 = vpop.f32.mrf.mxu0 }
  0xeb   :  { %v121_v10 = vadd.f32 %v155_v7, %v120_v6 }
  0xec   :  { %v182_v8 = vpop.f32.mrf.mxu0 }
  0xee   :  { %v123_v9 = vpop.f32.mrf.mxu0 }
  0xef   :  { %v124_v11 = vadd.f32 %v155_v7, %v123_v9 }
  0xf0   :  { %v183_v12 = vpop.f32.mrf.mxu0 }
  0xf1   :  { %v168_v13 = vpack.c.bf16 %v124_v11, %v121_v10 }
  0xf3   :  { %169 = vst [vmem:[#allocation7] sm:$0xff] %v168_v13  }
  0xf4   :  { %246 = shalt.err (!%p243_p0)
}
  0xf5   :  { %148 = dma.vmem_to_hbm [thread:$0]  %s143_s25, 128, %s312_s3, [#allocation4], %s262_s15, %s262_s15, %s263_s16  }
  0xf6   :  { %259 = dma.done.wait [#allocation4], 128  }
  0xf7   :  { %260 = vsyncadd [#allocation4], 4294967168 }
  0xf8   :  { %152 = vsyncpa [#allocation3], 1 }
  0xf9   :  { %153 = vsyncpa [#allocation6], 1 }
  0xfa   :  { %154 = vsyncpa [#allocation4], 1 }

</bundles_post_ra>
